<compile_context>
chip_gen: v7x
topology: tpu7x:2x2x1
jax: 0.10.0
libtpu: 0.0.40
codegen_flags: <defaults>
</compile_context>

<pallas_src>
import functools

import numpy as np

import jax
import jax.numpy as jnp
from jax.experimental import pallas as pl
from jax.experimental.pallas import tpu as pltpu


# ---------------------------------------------------------------------------
# Pallas kernel: the entire forward pass, fully VMEM-resident, 5 MXU dots.
# ---------------------------------------------------------------------------
def _dqn_fused_kernel(xs_ref, w1_ref, b1_ref, sel2_ref, w2_ref, b2_ref,
                      fc1w_ref, fc1b_ref, fc2w_ref, fc2b_ref, o_ref,
                      slab_ref, h2f_ref):
    f32, bf16 = jnp.float32, jnp.bfloat16
    oc1 = w1_ref.shape[1]                  # 16
    oc2 = w2_ref.shape[1]                  # 32
    kk2 = w2_ref.shape[0] // oc1           # 16  (= K2*K2 conv2 kernel positions)
    rows2 = slab_ref.shape[0]              # 8   (= B*OH2*OW2)

    # ---- conv1 + ReLU: one [rows1, C*64] x [C*64, oc1] dot (im2col in wrapper)
    h1 = jnp.dot(xs_ref[...], w1_ref[...], preferred_element_type=f32)
    h1 = jnp.maximum(h1 + b1_ref[...], 0.0).astype(bf16)          # [72, 16]

    # ---- conv2 im2col: ONE one-hot selection dot (rows ordered k-major), then
    # a tiny lane-merge relayout into the [rows2, kk2*oc1] patch slab via
    # sub-tile stores to a VMEM scratch (no MXU, no serial accumulation).
    g = jnp.dot(sel2_ref[...], h1, preferred_element_type=f32)    # [128, 16]
    for k in range(kk2):                                          # unrolled stores
        slab_ref[:, k * oc1:(k + 1) * oc1] = g[k * rows2:(k + 1) * rows2, :]

    # ---- conv2 + ReLU: one [rows2, 256] x [256, oc2] dot
    h2 = jnp.dot(slab_ref[...].astype(bf16), w2_ref[...], preferred_element_type=f32)
    h2 = jnp.maximum(h2 + b2_ref[...], 0.0)                       # [8, 32] f32

    # ---- torch.flatten (batch included): relayout to [1, rows2*oc2]
    for r in range(rows2):
        h2f_ref[:, r * oc2:(r + 1) * oc2] = h2[r:r + 1, :]

    # ---- fc1 + ReLU: one [1, 256] x [256, 256] dot
    h3 = jnp.dot(h2f_ref[...].astype(bf16), fc1w_ref[...], preferred_element_type=f32)
    h3 = jnp.maximum(h3 + fc1b_ref[...], 0.0).astype(bf16)        # [1, 256]

    # ---- fc2: one [1, 256] x [256, 128] dot into a lane-dense padded output
    o_ref[...] = jnp.dot(h3, fc2w_ref[...], preferred_element_type=f32) + fc2b_ref[...]


# ---------------------------------------------------------------------------
# Forward wrapper: wrapper-side conv1 im2col + one pallas_call.
# ---------------------------------------------------------------------------
@functools.partial(jax.jit, static_argnames=("out_actions",))
def deep_q_net_forward(packed, x, *, out_actions):
    B, C, H, W = x.shape
    K1, S1 = 8, 4
    assert H % S1 == 0 and W % S1 == 0 and K1 == 2 * S1 and H >= K1 and W >= K1
    P, Q = H // S1, W // S1
    OH1, OW1 = (H - K1) // S1 + 1, (W - K1) // S1 + 1
    KB = K1 // S1

    # Wrapper-side (jitted, XLA) conv1 im2col: space-to-depth + 2x2 block window.
    blk = x.reshape(B, C, P, S1, Q, S1).transpose(0, 2, 4, 1, 3, 5)     # [B,P,Q,C,4,4]
    wins = [blk[:, dp:dp + OH1, dq:dq + OW1] for dp in range(KB) for dq in range(KB)]
    win = jnp.stack(wins, axis=3)                                       # [B,OH1,OW1,KB*KB,C,4,4]
    win = win.reshape(B, OH1, OW1, KB, KB, C, S1, S1)
    win = win.transpose(0, 1, 2, 5, 3, 6, 4, 7)                         # (b,oh,ow,c,dp,si,dq,sj)
    xs = win.reshape(B * OH1 * OW1, C * K1 * K1).astype(jnp.bfloat16)   # cols = (c, ki, kj)

    # Guard against running with a batch / spatial size other than packed-for.
    assert xs.shape[0] == packed["sel2"].shape[1], \
        "packed params were built for a different batch/spatial size"
    assert xs.shape[1] == packed["w1"].shape[0]

    oc1 = packed["w1"].shape[1]
    oc2 = packed["w2"].shape[1]
    kxc = packed["w2"].shape[0]                 # K2*K2*oc1 (= 256)
    rows2 = packed["fc1_w"].shape[0] // oc2     # B*OH2*OW2 (= 8)
    n_pad = packed["fc2_w"].shape[1]            # 128 (lane-dense padded actions)

    vmem = lambda: pl.BlockSpec(memory_space=pltpu.MemorySpace.VMEM)
    out_pad = pl.pallas_call(
        _dqn_fused_kernel,
        out_shape=jax.ShapeDtypeStruct((1, n_pad), jnp.float32),
        in_specs=[vmem() for _ in range(10)],
        out_specs=vmem(),
        scratch_shapes=[pltpu.VMEM((rows2, kxc), jnp.float32),
                        pltpu.VMEM((1, rows2 * oc2), jnp.float32)],
    )(xs, packed["w1"], packed["b1"], packed["sel2"], packed["w2"], packed["b2"],
      packed["fc1_w"], packed["fc1_b"], packed["fc2_w"], packed["fc2_b"])
    # 1-D [out_actions], like Linear applied to a fully-flattened (batchless) input.
    return out_pad[0, :out_actions]


# ---------------------------------------------------------------------------
# One-time weight packing: bf16 weights in kernel layouts + one-hot selector.
# ---------------------------------------------------------------------------
def pack_params(params, input_shape, batch):
    C, H, W = input_shape
    K1, S1 = 8, 4
    K2, S2 = 4, 2
    OC1 = params["conv1_b"].shape[0]
    OC2 = params["conv2_b"].shape[0]
    OH1, OW1 = (H - K1) // S1 + 1, (W - K1) // S1 + 1
    OH2, OW2 = (OH1 - K2) // S2 + 1, (OW1 - K2) // S2 + 1
    B = batch
    rows1, rows2 = B * OH1 * OW1, B * OH2 * OW2
    bf = jnp.bfloat16

    # conv1 weight -> [C*K1*K1, OC1], rows ordered (c, ki, kj) to match xs cols.
    w1 = np.asarray(params["conv1_w"])                 # [OC1, C, K1, K1]
    w1p = w1.transpose(1, 2, 3, 0).reshape(C * K1 * K1, OC1)

    # conv2 im2col selector (one-hot), rows ordered k-major: (ki*K2+kj, b, oh2, ow2).
    sel2 = np.zeros((K2 * K2 * rows2, rows1), np.float32)
    for ki in range(K2):
        for kj in range(K2):
            k = ki * K2 + kj
            for b in range(B):
                for oh in range(OH2):
                    for ow in range(OW2):
                        r2 = (b * OH2 + oh) * OW2 + ow
                        r1 = (b * OH1 + S2 * oh + ki) * OW1 + (S2 * ow + kj)
                        sel2[k * rows2 + r2, r1] = 1.0

    # conv2 weight -> [K2*K2*OC1, OC2], rows ordered (ki, kj, c1) to match slab cols.
    w2 = np.asarray(params["conv2_w"])                 # [OC2, OC1, K2, K2]
    w2p = w2.transpose(2, 3, 1, 0).reshape(K2 * K2 * OC1, OC2)

    # fc1: permute input columns from torch.flatten order (b, oc2, oh2, ow2) to
    # the kernel's flatten order (b, oh2*ow2, oc2); store as [in, out].
    fc1 = np.asarray(params["fc1_w"])                  # [256, flat]
    hidden = fc1.shape[0]
    fc1p = fc1.reshape(hidden, B, OC2, OH2 * OW2).transpose(1, 3, 2, 0)
    fc1p = fc1p.reshape(rows2 * OC2, hidden)

    # fc2: [in, out], zero-padded to a lane-dense 128-wide output block.
    fc2 = np.asarray(params["fc2_w"])                  # [out_actions, 256]
    out_actions = fc2.shape[0]
    n_pad = ((out_actions + 127) // 128) * 128
    fc2p = np.zeros((fc2.shape[1], n_pad), np.float32)
    fc2p[:, :out_actions] = fc2.T
    fc2b = np.zeros((1, n_pad), np.float32)
    fc2b[0, :out_actions] = np.asarray(params["fc2_b"])

    return {
        "w1": jnp.asarray(w1p, bf),
        "b1": jnp.asarray(np.asarray(params["conv1_b"]).reshape(1, OC1), jnp.float32),
        "sel2": jnp.asarray(sel2, bf),
        "w2": jnp.asarray(w2p, bf),
        "b2": jnp.asarray(np.asarray(params["conv2_b"]).reshape(1, OC2), jnp.float32),
        "fc1_w": jnp.asarray(fc1p, bf),
        "fc1_b": jnp.asarray(np.asarray(params["fc1_b"]).reshape(1, hidden), jnp.float32),
        "fc2_w": jnp.asarray(fc2p, bf),
        "fc2_b": jnp.asarray(fc2b, jnp.float32),
    }


# ---------------------------------------------------------------------------
# Parameter init (PyTorch-style layout) and pure-JAX reference.
# ---------------------------------------------------------------------------
def init_params(key, input_shape, out_actions, batch):
    C, H, W = input_shape
    OH1, OW1 = (H - 8) // 4 + 1, (W - 8) // 4 + 1
    OH2, OW2 = (OH1 - 4) // 2 + 1, (OW1 - 4) // 2 + 1
    # TODO(synk): the original module declares fc1.in_features = 32*H*W, which is
    # inconsistent with torch.flatten() of the conv2 output; fc1 is sized with the
    # actual flattened length (batch*32*OH2*OW2) so the forward is runnable.
    flat = batch * 32 * OH2 * OW2

    ks = jax.random.split(key, 8)

    def u(k, shape, fan_in):
        bound = 1.0 / (fan_in ** 0.5)
        return jax.random.uniform(k, shape, jnp.float32, -bound, bound)

    return {
        "conv1_w": u(ks[0], (16, C, 8, 8), C * 8 * 8),
        "conv1_b": u(ks[1], (16,), C * 8 * 8),
        "conv2_w": u(ks[2], (32, 16, 4, 4), 16 * 4 * 4),
        "conv2_b": u(ks[3], (32,), 16 * 4 * 4),
        "fc1_w": u(ks[4], (256, flat), flat),
        "fc1_b": u(ks[5], (256,), flat),
        "fc2_w": u(ks[6], (out_actions, 256), 256),
        "fc2_b": u(ks[7], (out_actions,), 256),
    }


def _reference_forward(params, x):
    dn = ("NCHW", "OIHW", "NCHW")
    hp = jax.lax.Precision.HIGHEST
    h = jax.lax.conv_general_dilated(x, params["conv1_w"], (4, 4), "VALID",
                                     dimension_numbers=dn, precision=hp)
    h = jnp.maximum(h + params["conv1_b"][None, :, None, None], 0.0)
    h = jax.lax.conv_general_dilated(h, params["conv2_w"], (2, 2), "VALID",
                                     dimension_numbers=dn, precision=hp)
    h = jnp.maximum(h + params["conv2_b"][None, :, None, None], 0.0)
    flat = h.reshape(-1)
    h = jnp.maximum(jnp.dot(params["fc1_w"], flat, precision=hp) + params["fc1_b"], 0.0)
    return jnp.dot(params["fc2_w"], h, precision=hp) + params["fc2_b"]


if __name__ == "__main__":
    key = jax.random.PRNGKey(0)
    kx, kp = jax.random.split(key)

    batch = 2
    out_actions = 6
    input_shape = (4, 28, 28)   # (C, H, W): conv1 -> 6x6, conv2 -> 2x2, flatten -> 256

    x = jax.random.normal(kx, (batch,) + input_shape, jnp.float32)
    params = init_params(kp, input_shape, out_actions, batch)
    packed = pack_params(params, input_shape, batch)          # one-time repack

    out = deep_q_net_forward(packed, x, out_actions=out_actions)
    out = jax.block_until_ready(out)
    assert out.shape == (out_actions,), out.shape

    ref = jax.block_until_ready(_reference_forward(params, x))
    # bf16 MXU operands / f32 accumulation vs HIGHEST-precision reference.
    assert jnp.allclose(out, ref, rtol=2e-2, atol=2e-2), (out, ref)

    print("KERNEL_OK")
</pallas_src>

<mosaic_0001>
module attributes {stable_mosaic.version = 11 : i64} {
  func.func @_dqn_fused_kernel(%arg0: memref<72x256xbf16, #tpu.memory_space<vmem>>, %arg1: memref<256x16xbf16, #tpu.memory_space<vmem>>, %arg2: memref<1x16xf32, #tpu.memory_space<vmem>>, %arg3: memref<128x72xbf16, #tpu.memory_space<vmem>>, %arg4: memref<256x32xbf16, #tpu.memory_space<vmem>>, %arg5: memref<1x32xf32, #tpu.memory_space<vmem>>, %arg6: memref<256x256xbf16, #tpu.memory_space<vmem>>, %arg7: memref<1x256xf32, #tpu.memory_space<vmem>>, %arg8: memref<256x128xbf16, #tpu.memory_space<vmem>>, %arg9: memref<1x128xf32, #tpu.memory_space<vmem>>, %arg10: memref<1x128xf32, #tpu.memory_space<vmem>>, %arg11: memref<8x256xf32, #tpu.memory_space<vmem>>, %arg12: memref<1x256xf32, #tpu.memory_space<vmem>>) attributes {dimension_semantics = [], scalar_prefetch = 0 : i64, scratch_operands = 2 : i64, tpu.core_type = #tpu.core_type<tc>} {
    %c0 = arith.constant 0 : index
    %c0_0 = arith.constant 0 : index
    %0 = vector.load %arg0[%c0, %c0_0] : memref<72x256xbf16, #tpu.memory_space<vmem>>, vector<72x256xbf16>
    %c0_1 = arith.constant 0 : index
    %c0_2 = arith.constant 0 : index
    %1 = vector.load %arg1[%c0_1, %c0_2] : memref<256x16xbf16, #tpu.memory_space<vmem>>, vector<256x16xbf16>
    %cst = arith.constant dense<0.000000e+00> : vector<72x16xf32>
    %2 = tpu.matmul %0, %1, %cst {dimension_numbers = #tpu.dot_dimension_numbers<[1], [0], [0], [1], [0, 0, 1, 1], [], []>} : vector<72x256xbf16>, vector<256x16xbf16>, vector<72x16xf32> -> vector<72x16xf32>
    %c0_3 = arith.constant 0 : index
    %c0_4 = arith.constant 0 : index
    %3 = vector.load %arg2[%c0_3, %c0_4] : memref<1x16xf32, #tpu.memory_space<vmem>>, vector<1x16xf32>
    %4 = vector.broadcast %3 : vector<1x16xf32> to vector<72x16xf32>
    %5 = arith.addf %2, %4 : vector<72x16xf32>
    %cst_5 = arith.constant 0.000000e+00 : f32
    %6 = vector.broadcast %cst_5 : f32 to vector<72x16xf32>
    %7 = arith.maximumf %5, %6 : vector<72x16xf32>
    %8 = arith.truncf %7 : vector<72x16xf32> to vector<72x16xbf16>
    %c0_6 = arith.constant 0 : index
    %c0_7 = arith.constant 0 : index
    %9 = vector.load %arg3[%c0_6, %c0_7] : memref<128x72xbf16, #tpu.memory_space<vmem>>, vector<128x72xbf16>
    %cst_8 = arith.constant dense<0.000000e+00> : vector<128x16xf32>
    %10 = tpu.matmul %9, %8, %cst_8 {dimension_numbers = #tpu.dot_dimension_numbers<[1], [0], [0], [1], [0, 0, 1, 1], [], []>} : vector<128x72xbf16>, vector<72x16xbf16>, vector<128x16xf32> -> vector<128x16xf32>
    %11 = vector.extract_strided_slice %10 {offsets = [0, 0], sizes = [8, 16], strides = [1, 1]} : vector<128x16xf32> to vector<8x16xf32>
    %c0_9 = arith.constant 0 : index
    %c0_10 = arith.constant 0 : index
    %12 = vector.load %arg11[%c0_9, %c0_10] : memref<8x256xf32, #tpu.memory_space<vmem>>, vector<8x16xf32>
    tpu.vector_store %arg11[%c0_9, %c0_10], %11 {strides = array<i32>} : memref<8x256xf32, #tpu.memory_space<vmem>>, vector<8x16xf32>,
    %13 = vector.extract_strided_slice %10 {offsets = [8, 0], sizes = [8, 16], strides = [1, 1]} : vector<128x16xf32> to vector<8x16xf32>
    %c0_11 = arith.constant 0 : index
    %c16 = arith.constant 16 : index
    %14 = vector.load %arg11[%c0_11, %c16] : memref<8x256xf32, #tpu.memory_space<vmem>>, vector<8x16xf32>
    tpu.vector_store %arg11[%c0_11, %c16], %13 {strides = array<i32>} : memref<8x256xf32, #tpu.memory_space<vmem>>, vector<8x16xf32>,
    %15 = vector.extract_strided_slice %10 {offsets = [16, 0], sizes = [8, 16], strides = [1, 1]} : vector<128x16xf32> to vector<8x16xf32>
    %c0_12 = arith.constant 0 : index
    %c32 = arith.constant 32 : index
    %16 = vector.load %arg11[%c0_12, %c32] : memref<8x256xf32, #tpu.memory_space<vmem>>, vector<8x16xf32>
    tpu.vector_store %arg11[%c0_12, %c32], %15 {strides = array<i32>} : memref<8x256xf32, #tpu.memory_space<vmem>>, vector<8x16xf32>,
    %17 = vector.extract_strided_slice %10 {offsets = [24, 0], sizes = [8, 16], strides = [1, 1]} : vector<128x16xf32> to vector<8x16xf32>
    %c0_13 = arith.constant 0 : index
    %c48 = arith.constant 48 : index
    %18 = vector.load %arg11[%c0_13, %c48] : memref<8x256xf32, #tpu.memory_space<vmem>>, vector<8x16xf32>
    tpu.vector_store %arg11[%c0_13, %c48], %17 {strides = array<i32>} : memref<8x256xf32, #tpu.memory_space<vmem>>, vector<8x16xf32>,
    %19 = vector.extract_strided_slice %10 {offsets = [32, 0], sizes = [8, 16], strides = [1, 1]} : vector<128x16xf32> to vector<8x16xf32>
    %c0_14 = arith.constant 0 : index
    %c64 = arith.constant 64 : index
    %20 = vector.load %arg11[%c0_14, %c64] : memref<8x256xf32, #tpu.memory_space<vmem>>, vector<8x16xf32>
    tpu.vector_store %arg11[%c0_14, %c64], %19 {strides = array<i32>} : memref<8x256xf32, #tpu.memory_space<vmem>>, vector<8x16xf32>,
    %21 = vector.extract_strided_slice %10 {offsets = [40, 0], sizes = [8, 16], strides = [1, 1]} : vector<128x16xf32> to vector<8x16xf32>
    %c0_15 = arith.constant 0 : index
    %c80 = arith.constant 80 : index
    %22 = vector.load %arg11[%c0_15, %c80] : memref<8x256xf32, #tpu.memory_space<vmem>>, vector<8x16xf32>
    tpu.vector_store %arg11[%c0_15, %c80], %21 {strides = array<i32>} : memref<8x256xf32, #tpu.memory_space<vmem>>, vector<8x16xf32>,
    %23 = vector.extract_strided_slice %10 {offsets = [48, 0], sizes = [8, 16], strides = [1, 1]} : vector<128x16xf32> to vector<8x16xf32>
    %c0_16 = arith.constant 0 : index
    %c96 = arith.constant 96 : index
    %24 = vector.load %arg11[%c0_16, %c96] : memref<8x256xf32, #tpu.memory_space<vmem>>, vector<8x16xf32>
    tpu.vector_store %arg11[%c0_16, %c96], %23 {strides = array<i32>} : memref<8x256xf32, #tpu.memory_space<vmem>>, vector<8x16xf32>,
    %25 = vector.extract_strided_slice %10 {offsets = [56, 0], sizes = [8, 16], strides = [1, 1]} : vector<128x16xf32> to vector<8x16xf32>
    %c0_17 = arith.constant 0 : index
    %c112 = arith.constant 112 : index
    %26 = vector.load %arg11[%c0_17, %c112] : memref<8x256xf32, #tpu.memory_space<vmem>>, vector<8x16xf32>
    tpu.vector_store %arg11[%c0_17, %c112], %25 {strides = array<i32>} : memref<8x256xf32, #tpu.memory_space<vmem>>, vector<8x16xf32>,
    %27 = vector.extract_strided_slice %10 {offsets = [64, 0], sizes = [8, 16], strides = [1, 1]} : vector<128x16xf32> to vector<8x16xf32>
    %c0_18 = arith.constant 0 : index
    %c128 = arith.constant 128 : index
    %28 = vector.load %arg11[%c0_18, %c128] : memref<8x256xf32, #tpu.memory_space<vmem>>, vector<8x16xf32>
    tpu.vector_store %arg11[%c0_18, %c128], %27 {strides = array<i32>} : memref<8x256xf32, #tpu.memory_space<vmem>>, vector<8x16xf32>,
    %29 = vector.extract_strided_slice %10 {offsets = [72, 0], sizes = [8, 16], strides = [1, 1]} : vector<128x16xf32> to vector<8x16xf32>
    %c0_19 = arith.constant 0 : index
    %c144 = arith.constant 144 : index
    %30 = vector.load %arg11[%c0_19, %c144] : memref<8x256xf32, #tpu.memory_space<vmem>>, vector<8x16xf32>
    tpu.vector_store %arg11[%c0_19, %c144], %29 {strides = array<i32>} : memref<8x256xf32, #tpu.memory_space<vmem>>, vector<8x16xf32>,
    %31 = vector.extract_strided_slice %10 {offsets = [80, 0], sizes = [8, 16], strides = [1, 1]} : vector<128x16xf32> to vector<8x16xf32>
    %c0_20 = arith.constant 0 : index
    %c160 = arith.constant 160 : index
    %32 = vector.load %arg11[%c0_20, %c160] : memref<8x256xf32, #tpu.memory_space<vmem>>, vector<8x16xf32>
    tpu.vector_store %arg11[%c0_20, %c160], %31 {strides = array<i32>} : memref<8x256xf32, #tpu.memory_space<vmem>>, vector<8x16xf32>,
    %33 = vector.extract_strided_slice %10 {offsets = [88, 0], sizes = [8, 16], strides = [1, 1]} : vector<128x16xf32> to vector<8x16xf32>
    %c0_21 = arith.constant 0 : index
    %c176 = arith.constant 176 : index
    %34 = vector.load %arg11[%c0_21, %c176] : memref<8x256xf32, #tpu.memory_space<vmem>>, vector<8x16xf32>
    tpu.vector_store %arg11[%c0_21, %c176], %33 {strides = array<i32>} : memref<8x256xf32, #tpu.memory_space<vmem>>, vector<8x16xf32>,
    %35 = vector.extract_strided_slice %10 {offsets = [96, 0], sizes = [8, 16], strides = [1, 1]} : vector<128x16xf32> to vector<8x16xf32>
    %c0_22 = arith.constant 0 : index
    %c192 = arith.constant 192 : index
    %36 = vector.load %arg11[%c0_22, %c192] : memref<8x256xf32, #tpu.memory_space<vmem>>, vector<8x16xf32>
    tpu.vector_store %arg11[%c0_22, %c192], %35 {strides = array<i32>} : memref<8x256xf32, #tpu.memory_space<vmem>>, vector<8x16xf32>,
    %37 = vector.extract_strided_slice %10 {offsets = [104, 0], sizes = [8, 16], strides = [1, 1]} : vector<128x16xf32> to vector<8x16xf32>
    %c0_23 = arith.constant 0 : index
    %c208 = arith.constant 208 : index
    %38 = vector.load %arg11[%c0_23, %c208] : memref<8x256xf32, #tpu.memory_space<vmem>>, vector<8x16xf32>
    tpu.vector_store %arg11[%c0_23, %c208], %37 {strides = array<i32>} : memref<8x256xf32, #tpu.memory_space<vmem>>, vector<8x16xf32>,
    %39 = vector.extract_strided_slice %10 {offsets = [112, 0], sizes = [8, 16], strides = [1, 1]} : vector<128x16xf32> to vector<8x16xf32>
    %c0_24 = arith.constant 0 : index
    %c224 = arith.constant 224 : index
    %40 = vector.load %arg11[%c0_24, %c224] : memref<8x256xf32, #tpu.memory_space<vmem>>, vector<8x16xf32>
    tpu.vector_store %arg11[%c0_24, %c224], %39 {strides = array<i32>} : memref<8x256xf32, #tpu.memory_space<vmem>>, vector<8x16xf32>,
    %41 = vector.extract_strided_slice %10 {offsets = [120, 0], sizes = [8, 16], strides = [1, 1]} : vector<128x16xf32> to vector<8x16xf32>
    %c0_25 = arith.constant 0 : index
    %c240 = arith.constant 240 : index
    %42 = vector.load %arg11[%c0_25, %c240] : memref<8x256xf32, #tpu.memory_space<vmem>>, vector<8x16xf32>
    tpu.vector_store %arg11[%c0_25, %c240], %41 {strides = array<i32>} : memref<8x256xf32, #tpu.memory_space<vmem>>, vector<8x16xf32>,
    %c0_26 = arith.constant 0 : index
    %c0_27 = arith.constant 0 : index
    %43 = vector.load %arg11[%c0_26, %c0_27] : memref<8x256xf32, #tpu.memory_space<vmem>>, vector<8x256xf32>
    %44 = arith.truncf %43 : vector<8x256xf32> to vector<8x256xbf16>
    %c0_28 = arith.constant 0 : index
    %c0_29 = arith.constant 0 : index
    %45 = vector.load %arg4[%c0_28, %c0_29] : memref<256x32xbf16, #tpu.memory_space<vmem>>, vector<256x32xbf16>
    %cst_30 = arith.constant dense<0.000000e+00> : vector<8x32xf32>
    %46 = tpu.matmul %44, %45, %cst_30 {dimension_numbers = #tpu.dot_dimension_numbers<[1], [0], [0], [1], [0, 0, 1, 1], [], []>} : vector<8x256xbf16>, vector<256x32xbf16>, vector<8x32xf32> -> vector<8x32xf32>
    %c0_31 = arith.constant 0 : index
    %c0_32 = arith.constant 0 : index
    %47 = vector.load %arg5[%c0_31, %c0_32] : memref<1x32xf32, #tpu.memory_space<vmem>>, vector<1x32xf32>
    %48 = vector.broadcast %47 : vector<1x32xf32> to vector<8x32xf32>
    %49 = arith.addf %46, %48 : vector<8x32xf32>
    %cst_33 = arith.constant 0.000000e+00 : f32
    %50 = vector.broadcast %cst_33 : f32 to vector<8x32xf32>
    %51 = arith.maximumf %49, %50 : vector<8x32xf32>
    %52 = vector.extract_strided_slice %51 {offsets = [0, 0], sizes = [1, 32], strides = [1, 1]} : vector<8x32xf32> to vector<1x32xf32>
    %c0_34 = arith.constant 0 : index
    %c0_35 = arith.constant 0 : index
    %53 = vector.load %arg12[%c0_34, %c0_35] : memref<1x256xf32, #tpu.memory_space<vmem>>, vector<1x32xf32>
    tpu.vector_store %arg12[%c0_34, %c0_35], %52 {strides = array<i32>} : memref<1x256xf32, #tpu.memory_space<vmem>>, vector<1x32xf32>,
    %54 = vector.extract_strided_slice %51 {offsets = [1, 0], sizes = [1, 32], strides = [1, 1]} : vector<8x32xf32> to vector<1x32xf32>
    %c0_36 = arith.constant 0 : index
    %c32_37 = arith.constant 32 : index
    %55 = vector.load %arg12[%c0_36, %c32_37] : memref<1x256xf32, #tpu.memory_space<vmem>>, vector<1x32xf32>
    tpu.vector_store %arg12[%c0_36, %c32_37], %54 {strides = array<i32>} : memref<1x256xf32, #tpu.memory_space<vmem>>, vector<1x32xf32>,
    %56 = vector.extract_strided_slice %51 {offsets = [2, 0], sizes = [1, 32], strides = [1, 1]} : vector<8x32xf32> to vector<1x32xf32>
    %c0_38 = arith.constant 0 : index
    %c64_39 = arith.constant 64 : index
    %57 = vector.load %arg12[%c0_38, %c64_39] : memref<1x256xf32, #tpu.memory_space<vmem>>, vector<1x32xf32>
    tpu.vector_store %arg12[%c0_38, %c64_39], %56 {strides = array<i32>} : memref<1x256xf32, #tpu.memory_space<vmem>>, vector<1x32xf32>,
    %58 = vector.extract_strided_slice %51 {offsets = [3, 0], sizes = [1, 32], strides = [1, 1]} : vector<8x32xf32> to vector<1x32xf32>
    %c0_40 = arith.constant 0 : index
    %c96_41 = arith.constant 96 : index
    %59 = vector.load %arg12[%c0_40, %c96_41] : memref<1x256xf32, #tpu.memory_space<vmem>>, vector<1x32xf32>
    tpu.vector_store %arg12[%c0_40, %c96_41], %58 {strides = array<i32>} : memref<1x256xf32, #tpu.memory_space<vmem>>, vector<1x32xf32>,
    %60 = vector.extract_strided_slice %51 {offsets = [4, 0], sizes = [1, 32], strides = [1, 1]} : vector<8x32xf32> to vector<1x32xf32>
    %c0_42 = arith.constant 0 : index
    %c128_43 = arith.constant 128 : index
    %61 = vector.load %arg12[%c0_42, %c128_43] : memref<1x256xf32, #tpu.memory_space<vmem>>, vector<1x32xf32>
    tpu.vector_store %arg12[%c0_42, %c128_43], %60 {strides = array<i32>} : memref<1x256xf32, #tpu.memory_space<vmem>>, vector<1x32xf32>,
    %62 = vector.extract_strided_slice %51 {offsets = [5, 0], sizes = [1, 32], strides = [1, 1]} : vector<8x32xf32> to vector<1x32xf32>
    %c0_44 = arith.constant 0 : index
    %c160_45 = arith.constant 160 : index
    %63 = vector.load %arg12[%c0_44, %c160_45] : memref<1x256xf32, #tpu.memory_space<vmem>>, vector<1x32xf32>
    tpu.vector_store %arg12[%c0_44, %c160_45], %62 {strides = array<i32>} : memref<1x256xf32, #tpu.memory_space<vmem>>, vector<1x32xf32>,
    %64 = vector.extract_strided_slice %51 {offsets = [6, 0], sizes = [1, 32], strides = [1, 1]} : vector<8x32xf32> to vector<1x32xf32>
    %c0_46 = arith.constant 0 : index
    %c192_47 = arith.constant 192 : index
    %65 = vector.load %arg12[%c0_46, %c192_47] : memref<1x256xf32, #tpu.memory_space<vmem>>, vector<1x32xf32>
    tpu.vector_store %arg12[%c0_46, %c192_47], %64 {strides = array<i32>} : memref<1x256xf32, #tpu.memory_space<vmem>>, vector<1x32xf32>,
    %66 = vector.extract_strided_slice %51 {offsets = [7, 0], sizes = [1, 32], strides = [1, 1]} : vector<8x32xf32> to vector<1x32xf32>
    %c0_48 = arith.constant 0 : index
    %c224_49 = arith.constant 224 : index
    %67 = vector.load %arg12[%c0_48, %c224_49] : memref<1x256xf32, #tpu.memory_space<vmem>>, vector<1x32xf32>
    tpu.vector_store %arg12[%c0_48, %c224_49], %66 {strides = array<i32>} : memref<1x256xf32, #tpu.memory_space<vmem>>, vector<1x32xf32>,
    %c0_50 = arith.constant 0 : index
    %c0_51 = arith.constant 0 : index
    %68 = vector.load %arg12[%c0_50, %c0_51] : memref<1x256xf32, #tpu.memory_space<vmem>>, vector<1x256xf32>
    %69 = arith.truncf %68 : vector<1x256xf32> to vector<1x256xbf16>
    %c0_52 = arith.constant 0 : index
    %c0_53 = arith.constant 0 : index
    %70 = vector.load %arg6[%c0_52, %c0_53] : memref<256x256xbf16, #tpu.memory_space<vmem>>, vector<256x256xbf16>
    %cst_54 = arith.constant dense<0.000000e+00> : vector<1x256xf32>
    %71 = tpu.matmul %69, %70, %cst_54 {dimension_numbers = #tpu.dot_dimension_numbers<[1], [0], [0], [1], [0, 0, 1, 1], [], []>} : vector<1x256xbf16>, vector<256x256xbf16>, vector<1x256xf32> -> vector<1x256xf32>
    %c0_55 = arith.constant 0 : index
    %c0_56 = arith.constant 0 : index
    %72 = vector.load %arg7[%c0_55, %c0_56] : memref<1x256xf32, #tpu.memory_space<vmem>>, vector<1x256xf32>
    %73 = arith.addf %71, %72 : vector<1x256xf32>
    %cst_57 = arith.constant 0.000000e+00 : f32
    %74 = vector.broadcast %cst_57 : f32 to vector<1x256xf32>
    %75 = arith.maximumf %73, %74 : vector<1x256xf32>
    %76 = arith.truncf %75 : vector<1x256xf32> to vector<1x256xbf16>
    %c0_58 = arith.constant 0 : index
    %c0_59 = arith.constant 0 : index
    %77 = vector.load %arg8[%c0_58, %c0_59] : memref<256x128xbf16, #tpu.memory_space<vmem>>, vector<256x128xbf16>
    %cst_60 = arith.constant dense<0.000000e+00> : vector<1x128xf32>
    %78 = tpu.matmul %76, %77, %cst_60 {dimension_numbers = #tpu.dot_dimension_numbers<[1], [0], [0], [1], [0, 0, 1, 1], [], []>} : vector<1x256xbf16>, vector<256x128xbf16>, vector<1x128xf32> -> vector<1x128xf32>
    %c0_61 = arith.constant 0 : index
    %c0_62 = arith.constant 0 : index
    %79 = vector.load %arg9[%c0_61, %c0_62] : memref<1x128xf32, #tpu.memory_space<vmem>>, vector<1x128xf32>
    %80 = arith.addf %78, %79 : vector<1x128xf32>
    %c0_63 = arith.constant 0 : index
    %c0_64 = arith.constant 0 : index
    %81 = vector.load %arg10[%c0_63, %c0_64] : memref<1x128xf32, #tpu.memory_space<vmem>>, vector<1x128xf32>
    tpu.vector_store %arg10[%c0_63, %c0_64], %80 {strides = array<i32>} : memref<1x128xf32, #tpu.memory_space<vmem>>, vector<1x128xf32>,
    return
  }
}

</mosaic_0001>

<bundles_post_ra>
// kernel: deep_q_net_forward.1
= control target key start
LH: loop header
LB: loop body
LE: loop exit
PB: predicated region body
PF: predicated region fallthrough
CT: control target
= control target key end

     0   :  { %vm369_vm0 = vcmask 588800   ;;  %vm394_vm1 = vcmask 1043456   ;;  %vm495_vm2 = vcmask 130048   ;;  %s1646_s17 = smov 32   ;;  %s1647_s20 = smov 16   ;;  %vm501_vm3 = vcmask 261248   ;;  %s2074_s1 = inlined_call_operand.vmem [shape: bf16[256,16], index: 1, kind: input, shape index: {}]   ;;  %s2075_s0 = inlined_call_operand.vmem [shape: bf16[72,256], index: 0, kind: input, shape index: {}]   ;;  %s2076_s3 = inlined_call_operand.vmem [shape: bf16[128,72], index: 3, kind: input, shape index: {}]   ;;  %s2077_s2 = inlined_call_operand.vmem [shape: f32[1,16], index: 2, kind: input, shape index: {}]   ;;  %s2078_s4 = inlined_call_operand.vmem [shape: bf16[256,32], index: 4, kind: input, shape index: {}]   ;;  %s2079_s6 = inlined_call_operand.vmem [shape: bf16[256,256], index: 6, kind: input, shape index: {}]   ;;  %s2080_s5 = inlined_call_operand.vmem [shape: f32[1,32], index: 5, kind: input, shape index: {}]   ;;  %s2081_s8 = inlined_call_operand.vmem [shape: bf16[256,128], index: 8, kind: input, shape index: {}]   ;;  %s2082_s7 = inlined_call_operand.vmem [shape: f32[1,256], index: 7, kind: input, shape index: {}]   ;;  %s2083_s9 = inlined_call_operand.vmem [shape: f32[1,128], index: 9, kind: input, shape index: {}]   ;;  %s2084_s10 = inlined_call_operand.vmem [shape: f32[1,128], index: 10, kind: output, shape index: {}]  }
   0x1   :  { %v1528_v0 = vld [vmem:[%s2074_s1 + $0x40] sm:$0xff]   ;;  %v1530_v2 = vld [vmem:[%s2074_s1 + $0x48] sm:$0xff]   ;;  %v1532_v4 = vld [vmem:[%s2074_s1 + $0x50] sm:$0xff]   ;;  %s1648_s22 = smov 48   ;;  %s1650_s14 = smov 80   ;;  %vm507_vm4 = vcmask 392448  }
   0x2   :  { %v1529_v1 = vld [vmem:[%s2074_s1] sm:$0xff]   ;;  %1390 = vmatprep.subr.bf16.mxu0 %v1528_v0  ;;  %v1531_v3 = vld [vmem:[%s2074_s1 + $0x8] sm:$0xff]   ;;  %v1533_v5 = vld [vmem:[%s2074_s1 + $0x10] sm:$0xff]   ;;  %s1651_s19 = smov 96   ;;  %vm513_vm5 = vcmask 523648   ;;  %vm519_vm6 = vcmask 654848  }
   0x3   :  { %1391 = vmatpush3.bf16.msra.mxu0 %v1529_v1  ;;  %v1534_v6 = vld [vmem:[%s2074_s1 + $0x58] sm:$0xff]   ;;  %v1536_v8 = vld [vmem:[%s2074_s1 + $0x60] sm:$0xff]   ;;  %v1538_v10 = vld [vmem:[%s2074_s1 + $0x68] sm:$0xff]   ;;  %vm525_vm7 = vcmask 786048   ;;  %vm531_vm8 = vcmask 917248   ;;  %vm537_vm9 = vcmask 1048448  }
   0x4   :  { %1392 = vmatprep.subr.bf16.mxu0 %v1530_v2  ;;  %v1535_v7 = vld [vmem:[%s2074_s1 + $0x18] sm:$0xff]   ;;  %v1537_v9 = vld [vmem:[%s2074_s1 + $0x20] sm:$0xff]   ;;  %v1539_v12 = vld [vmem:[%s2074_s1 + $0x28] sm:$0xff]  }
   0x5   :  { %v1546_v11 = vld [vmem:[%s2075_s0 + $0x4] ss:$8 sps:$4 sm:$0xff]   ;;  %v1540_v13 = vld [vmem:[%s2074_s1 + $0x70] sm:$0xff]   ;;  %v1542_v15 = vld [vmem:[%s2074_s1 + $0x78] sm:$0xff]  }
   0x6   :  { %259 = vmatprep.mubr.bf16.mxu0 %v1546_v11  ;;  %v1541_v14 = vld [vmem:[%s2074_s1 + $0x30] sm:$0xff]   ;;  %v1543_v16 = vld [vmem:[%s2074_s1 + $0x38] sm:$0xff]   ;;  %v1544_v17 = vld [vmem:[%s2075_s0] ss:$8 sps:$4 sm:$0xff]  }
   0x7   :  { %1393 = vmatpush3.bf16.msra.mxu0 %v1531_v3  ;;  %v1547_v18 = vld [vmem:[%s2075_s0 + $0x14] ss:$8 sps:$4 sm:$0xff]   ;;  %v1549_v19 = vld [vmem:[%s2075_s0 + $0x10] ss:$8 sps:$4 sm:$0xff]   ;;  %v1550_v20 = vld [vmem:[%s2075_s0 + $0x24] ss:$8 sps:$4 sm:$0xff]  }
   0x8   :  { %1394 = vmatprep.subr.bf16.mxu0 %v1532_v4  ;;  %v1552_v21 = vld [vmem:[%s2075_s0 + $0x20] ss:$8 sps:$4 sm:$0xff]   ;;  %v1553_v22 = vld [vmem:[%s2075_s0 + $0x34] ss:$8 sps:$4 sm:$0xff]   ;;  %v1555_v24 = vld [vmem:[%s2075_s0 + $0x30] ss:$8 sps:$4 sm:$0xff]  }
   0x9   :  { %v44_v23 = vld [vmem:[%s2075_s0 + $0x40] sm:$0xff] }
   0xa   :  { %v1292_v25 = vcombine.high %v44_v23, %v44_v23  ;;  %v1291_v26 = vcombine.low %v44_v23, %v44_v23  ;;  %v1558_v27 = vld [vmem:[%s2076_s3] sm:$0xff]   ;;  %v1564_v23 = vld [vmem:[%s2076_s3 + $0x30] sm:$0xff]  }
   0xb   :  { %1395 = vmatpush3.bf16.msra.mxu0 %v1533_v5  ;;  %1503 = vmatprep.mubr.msk.bf16.mxu1 %vm369_vm0, %v1558_v27  ;;  %v1282_v29 = vld [vmem:[%s2077_s2] ss:$0 sm:$0xff]  ;;  %s1649_s2 = smov 64  }
   0xc   :  { %1396 = vmatprep.subr.bf16.mxu0 %v1534_v6 }
   0xf   :  { %1397 = vmatpush3.bf16.msra.mxu0 %v1535_v7 }
  0x10   :  { %1398 = vmatprep.subr.bf16.mxu0 %v1536_v8 }
  0x13   :  { %1399 = vmatpush3.bf16.msra.mxu0 %v1537_v9 }
  0x14   :  { %1400 = vmatprep.subr.bf16.mxu0 %v1538_v10 }
  0x17   :  { %1401 = vmatpush3.bf16.msra.mxu0 %v1539_v12 }
  0x18   :  { %1402 = vmatprep.subr.bf16.mxu0 %v1540_v13 }
  0x1b   :  { %1403 = vmatpush3.bf16.msra.mxu0 %v1541_v14 }
  0x1c   :  { %1404 = vmatprep.subr.bf16.mxu0 %v1542_v15 }
  0x1f   :  { %1405 = vmatpush3.bf16.msra.mxu0 %v1543_v16 }
  0x22   :  { %260 = vmatmul.mubr.bf16.vlgmr.msra.gmra.mrb[0].mxu0 %v1544_v17 }
  0x23   :  { %267 = vmatprep.mubr.bf16.mxu0 %v1547_v18  ;;  %v1559_v18 = vld [vmem:[%s2076_s3 + $0x8] sm:$0xff]  }
  0x2a   :  { %268 = vmatmul.mubr.bf16.gmra.mrb[4].mxu0 %v1549_v19  ;;  %v1560_v19 = vld [vmem:[%s2076_s3 + $0x10] sm:$0xff]  }
  0x2b   :  { %275 = vmatprep.mubr.bf16.mxu0 %v1550_v20  ;;  %v1561_v20 = vld [vmem:[%s2076_s3 + $0x18] sm:$0xff]  }
  0x32   :  { %276 = vmatmul.mubr.bf16.gmra.mrb[8].mxu0 %v1552_v21  ;;  %v1562_v21 = vld [vmem:[%s2076_s3 + $0x20] sm:$0xff]  }
  0x33   :  { %283 = vmatprep.mubr.bf16.mxu0 %v1553_v22  ;;  %v1563_v22 = vld [vmem:[%s2076_s3 + $0x28] sm:$0xff]  }
  0x3a   :  { %284 = vmatmul.mubr.bf16.gmra.mrb[12].mxu0 %v1555_v24  ;;  %v1565_v24 = vld [vmem:[%s2076_s3 + $0x38] sm:$0xff]  }
  0x3b   :  { %291 = vmatprep.mubr.bf16.mxu0 %v1292_v25 }
  0x42   :  { %292 = vmatmul.mubr.bf16.gmra.mrb[16].mxu0 %v1291_v26 }
  0xf5   :  { %v1406_v28 = vpop.f32.mrb[0].mxu0 }
  0xf6   :  { %v1407_v30 = vpop.f32.mrb[1].mxu0 }
  0xf7   :  { %v1408_v31 = vadd.f32 %v1407_v30, %v1406_v28  ;;  %v1409_v32 = vpop.f32.mrb[2].mxu0  ;;  %v1566_v28 = vld [vmem:[%s2078_s4 + $0x40] sm:$0xff]  }
  0xf8   :  { %v1410_v33 = vpop.f32.mrb[3].mxu0  ;;  %v1567_v30 = vld [vmem:[%s2078_s4] sm:$0xff]  }
  0xf9   :  { %v262_v34 = vadd.f32 %v1408_v31, %v1282_v29  ;;  %v1411_v35 = vadd.f32 %v1410_v33, %v1409_v32  ;;  %v1568_v31 = vld [vmem:[%s2078_s4 + $0x48] sm:$0xff]  }
  0xfa   :  { %v1569_v33 = vld [vmem:[%s2078_s4 + $0x8] sm:$0xff]  }
  0xfb   :  { %v265_v36 = vadd.f32 %v1411_v35, %v1282_v29  ;;  %v299_v37 = vmax.f32 %v262_v34, 0.0 }
  0xfd   :  { %v300_v38 = vmax.f32 %v265_v36, 0.0  ;;  %v1412_v39 = vpop.f32.mrb[4].mxu0 }
  0xfe   :  { %v1413_v40 = vpop.f32.mrb[5].mxu0 }
  0xff   :  { %v1414_v41 = vadd.f32 %v1413_v40, %v1412_v39  ;;  %v1415_v42 = vpop.f32.mrb[6].mxu0  ;;  %v308_v43 = vpack.c.bf16 %v300_v38, %v299_v37  ;;  %v1570_v37 = vld [vmem:[%s2078_s4 + $0x50] sm:$0xff]   ;;  %v1572_v39 = vld [vmem:[%s2078_s4 + $0x58] sm:$0xff]  }
 0x100   :  { %v1416_v44 = vpop.f32.mrb[7].mxu0  ;;  %v1571_v38 = vld [vmem:[%s2078_s4 + $0x10] sm:$0xff]   ;;  %v1573_v40 = vld [vmem:[%s2078_s4 + $0x18] sm:$0xff]  }
 0x101   :  { %v270_v45 = vadd.f32 %v1414_v41, %v1282_v29  ;;  %v1417_v46 = vadd.f32 %v1416_v44, %v1415_v42  ;;  %1493 = vmatprep.subr.bf16.mxu1 %v308_v43  ;;  %v1574_v44 = vld [vmem:[%s2078_s4 + $0x60] sm:$0xff]  }
 0x102   :  { %1494 = vmatpush3.bf16.msra.mxu1 %v308_v43 }
 0x103   :  { %v273_v47 = vadd.f32 %v1417_v46, %v1282_v29  ;;  %v301_v48 = vmax.f32 %v270_v45, 0.0  ;;  %v1575_v45 = vld [vmem:[%s2078_s4 + $0x20] sm:$0xff]  }
 0x105   :  { %v302_v49 = vmax.f32 %v273_v47, 0.0  ;;  %v1418_v50 = vpop.f32.mrb[8].mxu0  ;;  %v1576_v47 = vld [vmem:[%s2078_s4 + $0x68] sm:$0xff]  }
 0x106   :  { %v1419_v51 = vpop.f32.mrb[9].mxu0 }
 0x107   :  { %v1420_v52 = vadd.f32 %v1419_v51, %v1418_v50  ;;  %v1421_v53 = vpop.f32.mrb[10].mxu0  ;;  %v309_v54 = vpack.c.bf16 %v302_v49, %v301_v48  ;;  %v1577_v48 = vld [vmem:[%s2078_s4 + $0x28] sm:$0xff]  }
 0x108   :  { %v1422_v55 = vpop.f32.mrb[11].mxu0 }
 0x109   :  { %v278_v56 = vadd.f32 %v1420_v52, %v1282_v29  ;;  %v1423_v57 = vadd.f32 %v1422_v55, %v1421_v53  ;;  %1495 = vmatprep.subr.bf16.mxu1 %v309_v54  ;;  %v1578_v52 = vld [vmem:[%s2078_s4 + $0x70] sm:$0xff]   ;;  %v1580_v55 = vld [vmem:[%s2078_s4 + $0x78] sm:$0xff]  }
 0x10a   :  { %1496 = vmatpush3.bf16.msra.mxu1 %v309_v54  ;;  %v1579_v53 = vld [vmem:[%s2078_s4 + $0x30] sm:$0xff]  }
 0x10b   :  { %v281_v58 = vadd.f32 %v1423_v57, %v1282_v29  ;;  %v303_v59 = vmax.f32 %v278_v56, 0.0  ;;  %v1581_v56 = vld [vmem:[%s2078_s4 + $0x38] sm:$0xff]  }
 0x10d   :  { %v304_v60 = vmax.f32 %v281_v58, 0.0  ;;  %v1424_v61 = vpop.f32.mrb[12].mxu0 }
 0x10e   :  { %v1425_v62 = vpop.f32.mrb[13].mxu0 }
 0x10f   :  { %v1426_v63 = vadd.f32 %v1425_v62, %v1424_v61  ;;  %v1427_v0 = vpop.f32.mrb[14].mxu0  ;;  %v310_v1 = vpack.c.bf16 %v304_v60, %v303_v59 }
 0x110   :  { %v1428_v2 = vpop.f32.mrb[15].mxu0 }
 0x111   :  { %v286_v3 = vadd.f32 %v1426_v63, %v1282_v29  ;;  %v1429_v4 = vadd.f32 %v1428_v2, %v1427_v0  ;;  %1497 = vmatprep.subr.bf16.mxu1 %v310_v1 }
 0x112   :  { %1498 = vmatpush3.bf16.msra.mxu1 %v310_v1 }
 0x113   :  { %v289_v5 = vadd.f32 %v1429_v4, %v1282_v29  ;;  %v305_v6 = vmax.f32 %v286_v3, 0.0 }
 0x115   :  { %v306_v7 = vmax.f32 %v289_v5, 0.0  ;;  %v1430_v8 = vpop.f32.mrb[16].mxu0 }
 0x116   :  { %v1431_v9 = vpop.f32.mrb[17].mxu0 }
 0x117   :  { %v1432_v10 = vadd.f32 %v1431_v9, %v1430_v8  ;;  %v1433_v11 = vpop.f32.mrb[18].mxu0  ;;  %v311_v12 = vpack.c.bf16 %v306_v7, %v305_v6 }
 0x118   :  { %v1434_v13 = vpop.f32.mrb[19].mxu0  ;;  %v1582_v11 = vld [vmem:[%s2079_s6] ss:$8 sps:$4 sm:$0xff]  }
 0x119   :  { %v294_v14 = vadd.f32 %v1432_v10, %v1282_v29  ;;  %1499 = vmatprep.subr.bf16.mxu1 %v311_v12  ;;  %v1587_v13 = vld [vmem:[%s2079_s6 + $0x14] ss:$8 sps:$4 sm:$0xff]  }
 0x11a   :  { %1500 = vmatpush3.bf16.msra.mxu1 %v311_v12  ;;  %v1584_v12 = vld [vmem:[%s2079_s6 + $0x4] ss:$8 sps:$4 sm:$0xff]  }
 0x11b   :  { %v307_v15 = vmax.f32 %v294_v14, 0.0  ;;  %1063 = vmatprep.subr.bf16.mxu0 %v1584_v12  ;;  %v1585_v14 = vld [vmem:[%s2079_s6 + $0x10] ss:$8 sps:$4 sm:$0xff]  }
 0x11c   :  { %1064 = vmatpush1.bf16.msra.mxu0 %v1582_v11  ;;  %v1634_v11 = vld [vmem:[%s2081_s8 + $0x50] sm:$0xff]  }
 0x11d   :  { %v312_v16 = vpack.c.bf16 %v307_v15, %v307_v15  ;;  %1065 = vmatprep.subr.bf16.mxu0 %v1587_v13  ;;  %v1590_v15 = vld [vmem:[%s2079_s6 + $0x24] ss:$8 sps:$4 sm:$0xff]   ;;  %v1635_v12 = vld [vmem:[%s2081_s8 + $0x10] sm:$0xff]   ;;  %v1636_v13 = vld [vmem:[%s2081_s8 + $0x58] sm:$0xff]  }
 0x11f   :  { %1519 = vmatprep.subr.msk.bf16.mxu1 %vm394_vm1, %v312_v16  ;;  %v396_v17 = vsel %vm394_vm1, %v312_v16, 0  ;;  %v1588_v16 = vld [vmem:[%s2079_s6 + $0x20] ss:$8 sps:$4 sm:$0xff]  }
 0x120   :  { %1502 = vmatpush3.bf16.msra.mxu1 %v396_v17  ;;  %1066 = vmatpush1.bf16.msra.mxu0 %v1585_v14  ;;  %v1593_v17 = vld [vmem:[%s2079_s6 + $0x34] ss:$8 sps:$4 sm:$0xff]  }
 0x121   :  { %1449 = vmatprep.subr.bf16.mxu1 %v1566_v28  ;;  %1067 = vmatprep.subr.bf16.mxu0 %v1590_v15  ;;  %v1606_v28 = vld [vmem:[%s2079_s6 + $0x80] ss:$8 sps:$4 sm:$0xff]   ;;  %v1637_v14 = vld [vmem:[%s2081_s8 + $0x18] sm:$0xff]  }
 0x122   :  { %v1638_v15 = vld [vmem:[%s2081_s8 + $0x60] sm:$0xff]  }
 0x123   :  { %1504 = vmatmul.mubr.msk.bf16.vlgmr.msra.gmra.mrb[0].mxu1 %vm369_vm0, %v1559_v18  ;;  %v1591_v18 = vld [vmem:[%s2079_s6 + $0x30] ss:$8 sps:$4 sm:$0xff]  }
 0x124   :  { %1507 = vmatprep.mubr.msk.bf16.mxu1 %vm369_vm0, %v1560_v19  ;;  %1450 = vmatpush3.bf16.msra.mxu1 %v1567_v30  ;;  %v1596_v19 = vld [vmem:[%s2079_s6 + $0x44] ss:$8 sps:$4 sm:$0xff]   ;;  %v1609_v30 = vld [vmem:[%s2079_s6 + $0x90] ss:$8 sps:$4 sm:$0xff]  }
 0x125   :  { %1451 = vmatprep.subr.bf16.mxu1 %v1568_v31  ;;  %1068 = vmatpush1.bf16.msra.mxu0 %v1588_v16  ;;  %v1614_v31 = vld [vmem:[%s2079_s6 + $0xa4] ss:$8 sps:$4 sm:$0xff]  }
 0x126   :  { %1069 = vmatprep.subr.bf16.mxu0 %v1593_v17  ;;  %v1639_v16 = vld [vmem:[%s2081_s8 + $0x20] sm:$0xff]   ;;  %v1640_v17 = vld [vmem:[%s2081_s8 + $0x68] sm:$0xff]  }
 0x128   :  { %1452 = vmatpush3.bf16.msra.mxu1 %v1569_v33  ;;  %v755_v33 = vlaneseq }
 0x129   :  { %1453 = vmatprep.subr.bf16.mxu1 %v1570_v37  ;;  %1070 = vmatpush1.bf16.msra.mxu0 %v1591_v18  ;;  %v1641_v18 = vld [vmem:[%s2081_s8 + $0x28] sm:$0xff]  }
 0x12a   :  { %1071 = vmatprep.subr.bf16.mxu0 %v1596_v19  ;;  %vm1971_vm10 = vcmp.lt.s32.totalorder %v755_v33, 32  ;;  %vm786_vm11 = vcmp.ge.s32.totalorder %v755_v33, 32  ;;  %vm787_vm12 = vcmp.lt.s32.totalorder %v755_v33, 64  ;;  %vm794_vm14 = vcmp.ge.s32.totalorder %v755_v33, 64 }
 0x12b   :  { %1508 = vmatmul.mubr.msk.bf16.gmra.mrb[4].mxu1 %vm369_vm0, %v1561_v20  ;;  %v1594_v20 = vld [vmem:[%s2079_s6 + $0x40] ss:$8 sps:$4 sm:$0xff]   ;;  %vm788_vm13 = vmand %vm786_vm11, %vm787_vm12  ;;  %vm795_vm15 = vcmp.lt.s32.totalorder %v755_v33, 96  ;;  %vm802_vm1 = vcmp.ge.s32.totalorder %v755_v33, 96 }
 0x12c   :  { %1511 = vmatprep.mubr.msk.bf16.mxu1 %vm369_vm0, %v1562_v21  ;;  %1454 = vmatpush3.bf16.msra.mxu1 %v1571_v38  ;;  %v1599_v21 = vld [vmem:[%s2079_s6 + $0x54] ss:$8 sps:$4 sm:$0xff]   ;;  %v1958_v38 = vshrl.u32 %v755_v33, 7 }
 0x12d   :  { %1455 = vmatprep.subr.bf16.mxu1 %v1572_v39  ;;  %1072 = vmatpush1.bf16.msra.mxu0 %v1594_v20  ;;  %v1325_v39 = vld [vmem:[%s2080_s5] ss:$0 sm:$0xff] }
 0x12e   :  { %1073 = vmatprep.subr.bf16.mxu0 %v1599_v21 }
 0x130   :  { %1456 = vmatpush3.bf16.msra.mxu1 %v1573_v40 }
 0x131   :  { %1457 = vmatprep.subr.bf16.mxu1 %v1574_v44 }
 0x133   :  { %1512 = vmatmul.mubr.msk.bf16.gmra.mrb[8].mxu1 %vm369_vm0, %v1563_v22  ;;  %v1597_v22 = vld [vmem:[%s2079_s6 + $0x50] ss:$8 sps:$4 sm:$0xff]  }
 0x134   :  { %1515 = vmatprep.mubr.msk.bf16.mxu1 %vm369_vm0, %v1564_v23  ;;  %1458 = vmatpush3.bf16.msra.mxu1 %v1575_v45  ;;  %v1602_v23 = vld [vmem:[%s2079_s6 + $0x64] ss:$8 sps:$4 sm:$0xff]   ;;  %v1615_v45 = vld [vmem:[%s2079_s6 + $0xb0] ss:$8 sps:$4 sm:$0xff]  }
 0x135   :  { %1459 = vmatprep.subr.bf16.mxu1 %v1576_v47  ;;  %1074 = vmatpush1.bf16.msra.mxu0 %v1597_v22 }
 0x136   :  { %1075 = vmatprep.subr.bf16.mxu0 %v1602_v23 }
 0x138   :  { %1460 = vmatpush3.bf16.msra.mxu1 %v1577_v48 }
 0x139   :  { %1461 = vmatprep.subr.bf16.mxu1 %v1578_v52 }
 0x13b   :  { %1516 = vmatmul.mubr.msk.bf16.gmra.mrb[12].mxu1 %vm369_vm0, %v1565_v24  ;;  %v1600_v24 = vld [vmem:[%s2079_s6 + $0x60] ss:$8 sps:$4 sm:$0xff]   ;;  %vm796_vm0 = vmand %vm794_vm14, %vm795_vm15 }
 0x13c   :  { %1462 = vmatpush3.bf16.msra.mxu1 %v1579_v53  ;;  %1076 = vmatpush1.bf16.msra.mxu0 %v1600_v24 }
 0x13d   :  { %1463 = vmatprep.subr.bf16.mxu1 %v1580_v55 }
 0x140   :  { %1464 = vmatpush3.bf16.msra.mxu1 %v1581_v56  ;;  %v1623_v56 = vld [vmem:[%s2079_s6 + $0xd4] ss:$8 sps:$4 sm:$0xff]  }
 0x1f6   :  { %v1505_v25 = vpop.f32.mrb[0].mxu1 }
 0x1f7   :  { %504 = vrot.lane.b32.xlu1 %v1505_v25, %s1646_s17  ;;  %v432_v26 = vpop.f32.mrb[1].mxu1  ;;  %v1605_v25 = vld [vmem:[%s2079_s6 + $0x74] ss:$8 sps:$4 sm:$0xff]  }
 0x1f8   :  { %496 = vst.msk [vmem:[#allocation2] sm:$0xff] %vm495_vm2, %v432_v26  ;;  %v1506_v27 = vpop.f32.mrb[2].mxu1  ;;  %v1603_v26 = vld [vmem:[%s2079_s6 + $0x70] ss:$8 sps:$4 sm:$0xff]   ;;  %1077 = vmatprep.subr.bf16.mxu0 %v1605_v25  ;;  %v849_v25 = vsub.s32 0, %v1958_v38 }
 0x1f9   :  { %v435_v29 = vpop.f32.mrb[3].mxu1  ;;  %1078 = vmatpush1.bf16.msra.mxu0 %v1603_v26  ;;  %v853_v26 = vsub.s32 1, %v1958_v38 }
 0x1fa   :  { %498 = vrot.lane.b32.xlu0 %v435_v29, %s1647_s20  ;;  %v1611_v29 = vld [vmem:[%s2079_s6 + $0x94] ss:$8 sps:$4 sm:$0xff]  }
 0x1fb   :  { %510 = vrot.lane.b32.xlu1 %v1506_v27, %s1648_s22  ;;  %v1608_v27 = vld [vmem:[%s2079_s6 + $0x84] ss:$8 sps:$4 sm:$0xff]  }
 0x1fc   :  { %1079 = vmatprep.subr.bf16.mxu0 %v1608_v27 }
 0x1fd   :  { %1080 = vmatpush1.bf16.msra.mxu0 %v1606_v28 }
 0x1fe   :  { %v1509_v32 = vpop.f32.mrb[4].mxu1  ;;  %1081 = vmatprep.subr.bf16.mxu0 %v1611_v29 }
 0x1ff   :  { %v448_v34 = vpop.f32.mrb[5].mxu1 }
 0x200   :  { %516 = vrot.lane.b32.xlu1 %v448_v34, %s1649_s2  ;;  %v1510_v35 = vpop.f32.mrb[6].mxu1  ;;  %v1653_v34 = vmov 1966171168  }
 0x201   :  { %v451_v36 = vpop.f32.mrb[7].mxu1  ;;  %1082 = vmatpush1.bf16.msra.mxu0 %v1609_v30 }
 0x202   :  { %1083 = vmatprep.subr.bf16.mxu0 %v1614_v31 }
 0x204   :  { %522 = vrot.lane.b32.xlu1 %v451_v36, %s1650_s14 }
 0x206   :  { %v1513_v41 = vpop.f32.mrb[8].mxu1 }
 0x207   :  { %v464_v42 = vpop.f32.mrb[9].mxu1 }
 0x208   :  { %539 = vst.msk [vmem:[#allocation2 + $0x8] sm:$0xff] %vm495_vm2, %v464_v42  ;;  %546 = vrot.lane.b32.xlu1 %v1513_v41, %s1646_s17  ;;  %v1514_v43 = vpop.f32.mrb[10].mxu1  ;;  %vm803_vm2 = vcmp.lt.s32.totalorder %v755_v33, 128  ;;  %v1643_v33 = vld [vmem:[%s2081_s8 + $0x30] sm:$0xff]  }
 0x209   :  { %551 = vrot.lane.b32.xlu0 %v1514_v43, %s1648_s22  ;;  %v467_v46 = vpop.f32.mrb[11].mxu1  ;;  %s1652_s22 = smov 112   ;;  %v1617_v43 = vld [vmem:[%s2079_s6 + $0xb4] ss:$8 sps:$4 sm:$0xff]  }
 0x20c   :  { %528 = vrot.lane.b32.xlu1 %v1509_v32, %s1651_s19  ;;  %v1612_v32 = vld [vmem:[%s2079_s6 + $0xa0] ss:$8 sps:$4 sm:$0xff]  }
 0x20d   :  { %541 = vrot.lane.b32.xlu0 %v467_v46, %s1647_s20  ;;  %1084 = vmatpush1.bf16.msra.mxu0 %v1612_v32  ;;  %v1642_v32 = vld [vmem:[%s2081_s8 + $0x70] sm:$0xff]  }
 0x20e   :  { %v1517_v49 = vpop.f32.mrb[12].mxu1  ;;  %1085 = vmatprep.subr.bf16.mxu0 %v1617_v43 }
 0x20f   :  { %v480_v50 = vpop.f32.mrb[13].mxu1 }
 0x210   :  { %534 = vrot.lane.b32.xlu1 %v1510_v35, %s1652_s22  ;;  %v1518_v51 = vpop.f32.mrb[14].mxu1  ;;  %v762_v35 = vunpack.c.l.s4 %v1653_v34  ;;  %v1644_v34 = vld [vmem:[%s2081_s8 + $0x78] sm:$0xff]  }
 0x211   :  { %566 = vrot.lane.b32.xlu0 %v1517_v49, %s1651_s19  ;;  %v483_v54 = vpop.f32.mrb[15].mxu1  ;;  %1086 = vmatpush1.bf16.msra.mxu0 %v1615_v45 }
 0x212   :  { %v763_v37 = vunpack.c.0.s8 %v762_v35  ;;  %v1645_v35 = vld [vmem:[%s2081_s8 + $0x38] sm:$0xff]  }
 0x214   :  { %v766_v47 = vsub.s32 %v763_v37, %v1958_v38 }
 0x215   :  { %556 = vrot.lane.b32.xlu0 %v480_v50, %s1649_s2  ;;  %v1620_v50 = vld [vmem:[%s2079_s6 + $0xc4] ss:$8 sps:$4 sm:$0xff]  }
 0x216   :  { %1087 = vmatprep.subr.bf16.mxu0 %v1620_v50  ;;  %v1140_v50 = vld [vmem:[%s2083_s9] sm:$0x1] }
 0x219   :  { %561 = vrot.lane.b32.xlu0 %v483_v54, %s1650_s14 }
 0x21d   :  { %571 = vrot.lane.b32.xlu0 %v1518_v51, %s1652_s22  ;;  %v1618_v51 = vld [vmem:[%s2079_s6 + $0xc0] ss:$8 sps:$4 sm:$0xff]  }
 0x21e   :  { %1088 = vmatpush1.bf16.msra.mxu0 %v1618_v51 }
 0x21f   :  { %1089 = vmatprep.subr.bf16.mxu0 %v1623_v56 }
 0x269   :  { %v505_v57 = vpop.permute.xlu1 %504 }
 0x26c   :  { %v499_v58 = vpop.permute.xlu0 %498 }
 0x26d   :  { %502 = vst.msk [vmem:[#allocation2] sm:$0xff] %vm501_vm3, %v499_v58  ;;  %v511_v59 = vpop.permute.xlu1 %510  ;;  %v1626_v58 = vld [vmem:[%s2079_s6 + $0xe4] ss:$8 sps:$4 sm:$0xff]  }
 0x26e   :  { %508 = vst.msk [vmem:[#allocation2] sm:$0xff] %vm507_vm4, %v505_v57  ;;  %v1621_v57 = vld [vmem:[%s2079_s6 + $0xd0] ss:$8 sps:$4 sm:$0xff]  }
 0x26f   :  { %514 = vst.msk [vmem:[#allocation2] sm:$0xff] %vm513_vm5, %v511_v59  ;;  %1090 = vmatpush1.bf16.msra.mxu0 %v1621_v57 }
 0x270   :  { %1091 = vmatprep.subr.bf16.mxu0 %v1626_v58 }
 0x272   :  { %v517_v60 = vpop.permute.xlu1 %516 }
 0x273   :  { %520 = vst.msk [vmem:[#allocation2] sm:$0xff] %vm519_vm6, %v517_v60 }
 0x276   :  { %v523_v61 = vpop.permute.xlu1 %522 }
 0x277   :  { %526 = vst.msk [vmem:[#allocation2] sm:$0xff] %vm525_vm7, %v523_v61 }
 0x27a   :  { %v547_v62 = vpop.permute.xlu1 %546 }
 0x27b   :  { %v552_v63 = vpop.permute.xlu0 %551 }
 0x27e   :  { %v529_v0 = vpop.permute.xlu1 %528 }
 0x27f   :  { %532 = vst.msk [vmem:[#allocation2] sm:$0xff] %vm531_vm8, %v529_v0  ;;  %v542_v1 = vpop.permute.xlu0 %541 }
 0x280   :  { %544 = vst.msk [vmem:[#allocation2 + $0x8] sm:$0xff] %vm501_vm3, %v542_v1  ;;  %v1629_v1 = vld [vmem:[%s2079_s6 + $0xf4] ss:$8 sps:$4 sm:$0xff]   ;;  %vm804_vm3 = vmand %vm802_vm1, %vm803_vm2 }
 0x281   :  { %549 = vst.msk [vmem:[#allocation2 + $0x8] sm:$0xff] %vm507_vm4, %v547_v62 }
 0x282   :  { %554 = vst.msk [vmem:[#allocation2 + $0x8] sm:$0xff] %vm513_vm5, %v552_v63  ;;  %v535_v2 = vpop.permute.xlu1 %534  ;;  %v1624_v63 = vld [vmem:[%s2079_s6 + $0xe0] ss:$8 sps:$4 sm:$0xff]  }
 0x283   :  { %538 = vst.msk [vmem:[#allocation2] sm:$0xff] %vm537_vm9, %v535_v2  ;;  %v567_v3 = vpop.permute.xlu0 %566  ;;  %1092 = vmatpush1.bf16.msra.mxu0 %v1624_v63 }
 0x284   :  { %1093 = vmatprep.subr.bf16.mxu0 %v1629_v1 }
 0x287   :  { %v557_v4 = vpop.permute.xlu0 %556 }
 0x288   :  { %559 = vst.msk [vmem:[#allocation2 + $0x8] sm:$0xff] %vm519_vm6, %v557_v4 }
 0x28a   :  { %v575_v7 = vld [vmem:[#allocation2] sm:$0xff] }
 0x28b   :  { %v562_v5 = vpop.permute.xlu0 %561  ;;  %v577_v10 = vpack.c.bf16 %v575_v7, %v575_v7  ;;  %v1630_v7 = vld [vmem:[%s2081_s8 + $0x40] sm:$0xff]  }
 0x28c   :  { %564 = vst.msk [vmem:[#allocation2 + $0x8] sm:$0xff] %vm525_vm7, %v562_v5  ;;  %1471 = vmatprep.subr.bf16.mxu1 %v1630_v7 }
 0x28d   :  { %569 = vst.msk [vmem:[#allocation2 + $0x8] sm:$0xff] %vm531_vm8, %v567_v3  ;;  %v1627_v3 = vld [vmem:[%s2079_s6 + $0xf0] ss:$8 sps:$4 sm:$0xff]  }
 0x28e   :  { %1094 = vmatpush1.bf16.msra.mxu0 %v1627_v3 }
 0x28f   :  { %v572_v6 = vpop.permute.xlu0 %571 }
 0x290   :  { %574 = vst.msk [vmem:[#allocation2 + $0x8] sm:$0xff] %vm537_vm9, %v572_v6 }
 0x297   :  { %v576_v8 = vld [vmem:[#allocation2 + $0x8] sm:$0xff] }
 0x298   :  { %v578_v9 = vpack.c.bf16 %v576_v8, %v576_v8  ;;  %v1631_v8 = vld [vmem:[%s2081_s8] sm:$0xff]  }
 0x29a   :  { %746 = vmatprep.mubr.bf16.mxu1 %v578_v9  ;;  %v1632_v9 = vld [vmem:[%s2081_s8 + $0x48] sm:$0xff]  }
 0x29b   :  { %747 = vmatmul.mubr.bf16.vlgmr.msra.gmra.mrb[16].mxu1 %v577_v10  ;;  %v1633_v10 = vld [vmem:[%s2081_s8 + $0x8] sm:$0xff]  }
 0x29c   :  { %1472 = vmatpush3.bf16.msra.mxu1 %v1631_v8 }
 0x29d   :  { %1473 = vmatprep.subr.bf16.mxu1 %v1632_v9 }
 0x2a0   :  { %1474 = vmatpush3.bf16.msra.mxu1 %v1633_v10 }
 0x2a1   :  { %1475 = vmatprep.subr.bf16.mxu1 %v1634_v11 }
 0x2a4   :  { %1476 = vmatpush3.bf16.msra.mxu1 %v1635_v12 }
 0x2a5   :  { %1477 = vmatprep.subr.bf16.mxu1 %v1636_v13 }
 0x2a8   :  { %1478 = vmatpush3.bf16.msra.mxu1 %v1637_v14 }
 0x2a9   :  { %1479 = vmatprep.subr.bf16.mxu1 %v1638_v15 }
 0x2ac   :  { %1480 = vmatpush3.bf16.msra.mxu1 %v1639_v16 }
 0x2ad   :  { %1481 = vmatprep.subr.bf16.mxu1 %v1640_v17 }
 0x2b0   :  { %1482 = vmatpush3.bf16.msra.mxu1 %v1641_v18 }
 0x2b1   :  { %1483 = vmatprep.subr.bf16.mxu1 %v1642_v32 }
 0x2b4   :  { %1484 = vmatpush3.bf16.msra.mxu1 %v1643_v33 }
 0x2b5   :  { %1485 = vmatprep.subr.bf16.mxu1 %v1644_v34 }
 0x2b8   :  { %1486 = vmatpush3.bf16.msra.mxu1 %v1645_v35 }
 0x36e   :  { %v1465_v36 = vpop.f32.mrb[16].mxu1 }
 0x36f   :  { %v1466_v40 = vpop.f32.mrb[17].mxu1 }
 0x370   :  { %v1467_v41 = vadd.f32 %v1466_v40, %v1465_v36  ;;  %v1468_v42 = vpop.f32.mrb[18].mxu1  ;;  %v891_v36 = vld [vmem:[%s2082_s7] sm:$0x3] }
 0x371   :  { %v1469_v44 = vpop.f32.mrb[19].mxu1  ;;  %v1056_v37 = vrot.slane %v891_v36, %v849_v25  ;;  %v1060_v38 = vrot.slane %v891_v36, %v853_v26 }
 0x372   :  { %v749_v46 = vadd.f32 %v1467_v41, %v1325_v39 }
 0x374   :  { %v754_v49 = vmax.f32 %v749_v46, 0.0 }
 0x376   :  { %v767_v52 = vrot.slane %v754_v49, %v766_v47  ;;  %v806_v53 = vcombine.high %v754_v49, %v754_v49  ;;  %759 = vst.msk [vmem:[#allocation3] sm:$0x1] %vm1971_vm10, %v754_v49 }
 0x378   :  { %v768_v54 = vcombine.high %v767_v52, %v767_v52  ;;  %v813_v55 = vrot.slane %v806_v53, %v766_v47  ;;  %v775_v61 = vrot.slane %v767_v52, %v766_v47 }
 0x37a   :  { %v782_v59 = vrot.slane %v768_v54, %v766_v47  ;;  %v823_v60 = vcombine.high %v813_v55, %v813_v55  ;;  %v820_v62 = vrot.slane %v813_v55, %v766_v47  ;;  %v790_v2 = vcombine.high %v775_v61, %v775_v61 }
 0x37c   :  { %783 = vrot.lane.b32.xlu0 %v782_v59, %s1646_s17  ;;  %v830_v0 = vrot.slane %v823_v60, %v766_v47  ;;  %822 = vst.msk [vmem:[#allocation3 + $0x1] sm:$0x1] %vm1971_vm10, %v820_v62  ;;  %v835_v4 = vcombine.high %v820_v62, %v820_v62  ;;  %v798_v5 = vcombine.high %v782_v59, %v782_v59 }
 0x37e   :  { %831 = vrot.lane.b32.xlu1 %v830_v0, %s1646_s17  ;;  %v840_v6 = vcombine.high %v830_v0, %v830_v0 }
 0x380   :  { %791 = vrot.lane.b32.xlu0 %v790_v2, %s1649_s2 }
 0x382   :  { %836 = vrot.lane.b32.xlu1 %v835_v4, %s1649_s2 }
 0x384   :  { %799 = vrot.lane.b32.xlu0 %v798_v5, %s1651_s19 }
 0x386   :  { %841 = vrot.lane.b32.xlu1 %v840_v6, %s1651_s19 }
 0x3ee   :  { %v784_v19 = vpop.permute.xlu0 %783 }
 0x3ef   :  { %789 = vst.msk [vmem:[#allocation3] sm:$0x1] %vm788_vm13, %v784_v19 }
 0x3f0   :  { %v832_v20 = vpop.permute.xlu1 %831 }
 0x3f1   :  { %834 = vst.msk [vmem:[#allocation3 + $0x1] sm:$0x1] %vm788_vm13, %v832_v20 }
 0x3f2   :  { %v792_v21 = vpop.permute.xlu0 %791 }
 0x3f3   :  { %797 = vst.msk [vmem:[#allocation3] sm:$0x1] %vm796_vm0, %v792_v21 }
 0x3f4   :  { %v837_v22 = vpop.permute.xlu1 %836 }
 0x3f5   :  { %839 = vst.msk [vmem:[#allocation3 + $0x1] sm:$0x1] %vm796_vm0, %v837_v22 }
 0x3f6   :  { %v800_v23 = vpop.permute.xlu0 %799 }
 0x3f7   :  { %805 = vst.msk [vmem:[#allocation3] sm:$0x1] %vm804_vm3, %v800_v23 }
 0x3f8   :  { %v842_v24 = vpop.permute.xlu1 %841 }
 0x3f9   :  { %844 = vst.msk [vmem:[#allocation3 + $0x1] sm:$0x1] %vm804_vm3, %v842_v24 }
 0x400   :  { %v845_v27 = vld [vmem:[#allocation3] sm:$0x3] }
 0x401   :  { %v850_v28 = vrot.slane %v845_v27, %v849_v25  ;;  %v854_v29 = vrot.slane %v845_v27, %v853_v26 }
 0x403   :  { %v857_v30 = vpack.c.bf16 %v850_v28, %v850_v28  ;;  %v858_v31 = vpack.c.bf16 %v854_v29, %v854_v29 }
 0x405   :  { %1095 = vmatprep.mubr.bf16.mxu0 %v858_v31 }
 0x406   :  { %1096 = vmatmul.mubr.bf16.vlgmr.msra.gmra.mrb[20].mxu0 %v857_v30 }
 0x4d9   :  { %v1097_v39 = vpop.f32.mrb[20].mxu0 }
 0x4da   :  { %v1098_v40 = vadd.f32 %v1097_v39, %v1056_v37  ;;  %v1099_v41 = vpop.f32.mrb[21].mxu0 }
 0x4db   :  { %v1100_v42 = vadd.f32 %v1099_v41, %v1060_v38  ;;  %v1101_v43 = vpop.f32.mrb[22].mxu0 }
 0x4dc   :  { %v1104_v44 = vmax.f32 %v1098_v40, 0.0  ;;  %v1102_v45 = vpop.f32.mrb[23].mxu0 }
 0x4dd   :  { %v1105_v46 = vmax.f32 %v1100_v42, 0.0 }
 0x4de   :  { %v1106_v48 = vpack.c.bf16 %v1104_v44, %v1104_v44 }
 0x4df   :  { %v1107_v47 = vpack.c.bf16 %v1105_v46, %v1105_v46 }
 0x4e1   :  { %1269 = vmatprep.mubr.bf16.mxu1 %v1107_v47 }
 0x4e2   :  { %1270 = vmatmul.mubr.bf16.vlgmr.msra.gmra.mrb[20].mxu1 %v1106_v48 }
 0x5b5   :  { %v1487_v49 = vpop.f32.mrb[20].mxu1 }
 0x5b6   :  { %v1488_v51 = vpop.f32.mrb[21].mxu1 }
 0x5b7   :  { %v1489_v52 = vadd.f32 %v1488_v51, %v1487_v49  ;;  %v1490_v53 = vpop.f32.mrb[22].mxu1 }
 0x5b8   :  { %v1491_v54 = vpop.f32.mrb[23].mxu1 }
 0x5b9   :  { %v1272_v55 = vadd.f32 %v1489_v52, %v1140_v50 }
 0x5bb   :  { %1277 = vst [vmem:[%s2084_s10] sm:$0x1] %v1272_v55 }

</bundles_post_ra>
